<compile_context>
chip_gen: v7x
topology: tpu7x:2x2x1
jax: 0.10.0
libtpu: 0.0.40
codegen_flags: <defaults>
</compile_context>

<pallas_src>
import functools

import jax
import jax.numpy as jnp
from jax import lax
from jax.experimental import pallas as pl
from jax.experimental.pallas import tpu as pltpu

BN_EPS = 1e-5


def _round_up(n: int, m: int) -> int:
    return ((n + m - 1) // m) * m


def loan_block3_kernel(x_ref, gamma_ref, beta_ref, w1_ref, b1_ref, w2_ref,
                       b2_ref, o_ref, *, true_batch: float):
    """One LoanModelBlock3 forward on a lane-dense (Bp, Hp) tile.

    All refs carry a leading size-1 block dim (the L grid axis)."""
    x = x_ref[0]                                        # (Bp, Hp), f32
    if x.dtype != jnp.float32:
        x = x.astype(jnp.float32)

    # ---- BatchNorm1d, training-mode batch statistics, single fused pass ----
    # Padded rows are all-zero, so s1/s2 sum only over real rows; divide by the
    # true (unpadded) batch size.
    inv_b = 1.0 / true_batch
    s1 = jnp.sum(x, axis=0, keepdims=True)              # (1, Hp)
    s2 = jnp.sum(x * x, axis=0, keepdims=True)          # (1, Hp)
    mean = s1 * inv_b
    var = s2 * inv_b - mean * mean                      # biased batch variance
    a = gamma_ref[0] * lax.rsqrt(var + BN_EPS)          # (1, Hp), rsqrt -> EUP
    b = beta_ref[0] - mean * a                          # (1, Hp)
    xn = x * a + b                                      # folded BN: 1 mul + 1 add

    # ---- linear1 -> ReLU -> linear2 (f32 MXU) ----
    h = jnp.dot(xn, w1_ref[0], preferred_element_type=jnp.float32) + b1_ref[0]
    h = jnp.maximum(h, 0.0)                             # (Bp, H4p)
    y = jnp.dot(h, w2_ref[0], preferred_element_type=jnp.float32) + b2_ref[0]

    # ---- residual add with the ORIGINAL (pre-BN) x ----
    o_ref[0] = (y + x).astype(o_ref.dtype)


def loan_model_block3_batched(x, gamma, beta, w1, b1, w2, b2):
    """L independent LoanModelBlock3 forwards in one pallas_call.

    Shapes: x (L,B,H); gamma/beta/b2 (L,1,H); w1 (L,H,4H); b1 (L,1,4H); w2 (L,4H,H).
    """
    L, B, H = x.shape
    H4 = 4 * H
    Bp = _round_up(B, 8)          # sublane multiple
    Hp = _round_up(H, 128)        # lane-dense elementwise / output width
    H4p = _round_up(H4, 128)

    def pad_to(a, shape):
        return jnp.pad(a, [(0, s - d) for s, d in zip(shape, a.shape)])

    xp = pad_to(x, (L, Bp, Hp))
    gp = pad_to(gamma, (L, 1, Hp))
    btp = pad_to(beta, (L, 1, Hp))
    w1p = pad_to(w1, (L, Hp, H4p))
    b1p = pad_to(b1, (L, 1, H4p))
    w2p = pad_to(w2, (L, H4p, Hp))
    b2p = pad_to(b2, (L, 1, Hp))

    kernel = functools.partial(loan_block3_kernel, true_batch=float(B))

    # Advisory cost hint for the XLA scheduler (two matmuls + elementwise).
    flops = int(L * (2 * Bp * Hp * H4p + 2 * Bp * H4p * Hp + 8 * Bp * Hp))
    bytes_accessed = int(4 * (xp.size + gp.size + btp.size + w1p.size
                              + b1p.size + w2p.size + b2p.size + L * Bp * Hp))

    def blk(*shape):
        return pl.BlockSpec((1,) + tuple(shape), lambda l: (l, 0, 0))

    out = pl.pallas_call(
        kernel,
        out_shape=jax.ShapeDtypeStruct((L, Bp, Hp), x.dtype),
        grid=(L,),
        in_specs=[
            blk(Bp, Hp),      # x
            blk(1, Hp),       # gamma
            blk(1, Hp),       # beta
            blk(Hp, H4p),     # w1
            blk(1, H4p),      # b1
            blk(H4p, Hp),     # w2
            blk(1, Hp),       # b2
        ],
        out_specs=blk(Bp, Hp),
        compiler_params=pltpu.CompilerParams(
            dimension_semantics=("parallel",)),   # shard blocks across TCs (v7x)
        cost_estimate=pl.CostEstimate(
            flops=flops, transcendentals=int(L * Hp),
            bytes_accessed=bytes_accessed),
    )(xp, gp, btp, w1p, b1p, w2p, b2p)

    return out[:, :B, :H]


def loan_model_block3(x, gamma, beta, w1, b1, w2, b2):
    """Single-module forward: x (B,H); params in (in, out) / (1, out) layout."""
    out = loan_model_block3_batched(
        x[None], gamma[None], beta[None], w1[None], b1[None], w2[None], b2[None])
    return out[0]


def reference_forward(x, gamma, beta, w1, b1, w2, b2):
    # Pure-JAX mirror of the PyTorch forward (training-mode BatchNorm1d).
    mean = jnp.mean(x, axis=0, keepdims=True)
    var = jnp.mean((x - mean) ** 2, axis=0, keepdims=True)   # biased variance
    xn = (x - mean) / jnp.sqrt(var + BN_EPS) * gamma + beta
    h = jnp.maximum(xn @ w1 + b1, 0.0)
    y = h @ w2 + b2
    return y + x


if __name__ == "__main__":
    B, H = 8, 32
    H4 = 4 * H

    key = jax.random.PRNGKey(0)
    kx, kw1, kb1, kw2, kb2, kbatch = jax.random.split(key, 6)

    x = jax.random.normal(kx, (B, H), dtype=jnp.float32)

    # Deterministic parameter init (uniform, roughly nn.Linear scale).
    lim1 = 1.0 / (H ** 0.5)
    lim2 = 1.0 / (H4 ** 0.5)
    w1 = jax.random.uniform(kw1, (H, H4), jnp.float32, -lim1, lim1)   # (in, out)
    b1 = jax.random.uniform(kb1, (1, H4), jnp.float32, -lim1, lim1)
    w2 = jax.random.uniform(kw2, (H4, H), jnp.float32, -lim2, lim2)   # (in, out)
    b2 = jax.random.uniform(kb2, (1, H), jnp.float32, -lim2, lim2)
    gamma = jnp.ones((1, H), jnp.float32)   # BatchNorm1d weight init
    beta = jnp.zeros((1, H), jnp.float32)   # BatchNorm1d bias init

    # --- single-module forward (exactly the PyTorch module semantics) ---
    out = loan_model_block3(x, gamma, beta, w1, b1, w2, b2)
    out = jax.block_until_ready(out)
    ref = reference_forward(x, gamma, beta, w1, b1, w2, b2)
    assert out.shape == (B, H)
    assert jnp.allclose(out, ref, atol=2e-4, rtol=2e-4), "single-block mismatch"

    # --- batched path: L independent blocks in one pallas_call (grid, parallel) ---
    L = 4
    ks = jax.random.split(kbatch, 5)
    xs = jax.random.normal(ks[0], (L, B, H), dtype=jnp.float32)
    w1s = jax.random.uniform(ks[1], (L, H, H4), jnp.float32, -lim1, lim1)
    b1s = jax.random.uniform(ks[2], (L, 1, H4), jnp.float32, -lim1, lim1)
    w2s = jax.random.uniform(ks[3], (L, H4, H), jnp.float32, -lim2, lim2)
    b2s = jax.random.uniform(ks[4], (L, 1, H), jnp.float32, -lim2, lim2)
    gammas = jnp.ones((L, 1, H), jnp.float32)
    betas = jnp.zeros((L, 1, H), jnp.float32)

    outs = loan_model_block3_batched(xs, gammas, betas, w1s, b1s, w2s, b2s)
    outs = jax.block_until_ready(outs)
    refs = jax.vmap(reference_forward)(xs, gammas, betas, w1s, b1s, w2s, b2s)
    assert outs.shape == (L, B, H)
    assert jnp.allclose(outs, refs, atol=2e-4, rtol=2e-4), "batched mismatch"

    # TODO(synk): BatchNorm1d eval-mode (running statistics) and the B==1
    # training error are not modeled; kernel always uses batch statistics.
    print("KERNEL_OK")
</pallas_src>

<mosaic_0001>
module attributes {stable_mosaic.version = 11 : i64} {
  func.func @loan_block3_kernel(%arg0: i32, %arg1: memref<1x8x128xf32, #tpu.memory_space<vmem>>, %arg2: memref<1x1x128xf32, #tpu.memory_space<vmem>>, %arg3: memref<1x1x128xf32, #tpu.memory_space<vmem>>, %arg4: memref<1x128x128xf32, #tpu.memory_space<vmem>>, %arg5: memref<1x1x128xf32, #tpu.memory_space<vmem>>, %arg6: memref<1x128x128xf32, #tpu.memory_space<vmem>>, %arg7: memref<1x1x128xf32, #tpu.memory_space<vmem>>, %arg8: memref<1x8x128xf32, #tpu.memory_space<vmem>>) attributes {dimension_semantics = [#tpu.dimension_semantics<parallel>], iteration_bounds = array<i64: 1>, scalar_prefetch = 0 : i64, scratch_operands = 0 : i64, tpu.core_type = #tpu.core_type<tc>, window_params = [{transform_indices = @transform_0, window_bounds = array<i64: 1, 8, 128>}, {transform_indices = @transform_1, window_bounds = array<i64: 1, 1, 128>}, {transform_indices = @transform_2, window_bounds = array<i64: 1, 1, 128>}, {transform_indices = @transform_3, window_bounds = array<i64: 1, 128, 128>}, {transform_indices = @transform_4, window_bounds = array<i64: 1, 1, 128>}, {transform_indices = @transform_5, window_bounds = array<i64: 1, 128, 128>}, {transform_indices = @transform_6, window_bounds = array<i64: 1, 1, 128>}, {transform_indices = @transform_7, window_bounds = array<i64: 1, 8, 128>}]} {
    %c0 = arith.constant 0 : index
    %c0_0 = arith.constant 0 : index
    %c0_1 = arith.constant 0 : index
    %0 = vector.load %arg1[%c0, %c0_0, %c0_1] : memref<1x8x128xf32, #tpu.memory_space<vmem>>, vector<1x8x128xf32>
    %1 = vector.shape_cast %0 : vector<1x8x128xf32> to vector<8x128xf32>
    %cst = arith.constant dense<0.000000e+00> : vector<128xf32>
    %2 = vector.multi_reduction <add>, %1, %cst [0] : vector<8x128xf32> to vector<128xf32>
    %3 = vector.shape_cast %2 : vector<128xf32> to vector<1x128xf32>
    %4 = arith.mulf %1, %1 : vector<8x128xf32>
    %cst_2 = arith.constant dense<0.000000e+00> : vector<128xf32>
    %5 = vector.multi_reduction <add>, %4, %cst_2 [0] : vector<8x128xf32> to vector<128xf32>
    %6 = vector.shape_cast %5 : vector<128xf32> to vector<1x128xf32>
    %cst_3 = arith.constant 1.250000e-01 : f32
    %7 = vector.broadcast %cst_3 : f32 to vector<1x128xf32>
    %8 = arith.mulf %3, %7 : vector<1x128xf32>
    %cst_4 = arith.constant 1.250000e-01 : f32
    %9 = vector.broadcast %cst_4 : f32 to vector<1x128xf32>
    %10 = arith.mulf %6, %9 : vector<1x128xf32>
    %11 = arith.mulf %8, %8 : vector<1x128xf32>
    %12 = arith.subf %10, %11 : vector<1x128xf32>
    %c0_5 = arith.constant 0 : index
    %c0_6 = arith.constant 0 : index
    %c0_7 = arith.constant 0 : index
    %13 = vector.load %arg2[%c0_5, %c0_6, %c0_7] : memref<1x1x128xf32, #tpu.memory_space<vmem>>, vector<1x1x128xf32>
    %14 = vector.shape_cast %13 : vector<1x1x128xf32> to vector<1x128xf32>
    %cst_8 = arith.constant 9.99999974E-6 : f32
    %15 = vector.broadcast %cst_8 : f32 to vector<1x128xf32>
    %16 = arith.addf %12, %15 : vector<1x128xf32>
    %17 = math.rsqrt %16 : vector<1x128xf32>
    %18 = arith.mulf %14, %17 : vector<1x128xf32>
    %c0_9 = arith.constant 0 : index
    %c0_10 = arith.constant 0 : index
    %c0_11 = arith.constant 0 : index
    %19 = vector.load %arg3[%c0_9, %c0_10, %c0_11] : memref<1x1x128xf32, #tpu.memory_space<vmem>>, vector<1x1x128xf32>
    %20 = vector.shape_cast %19 : vector<1x1x128xf32> to vector<1x128xf32>
    %21 = arith.mulf %8, %18 : vector<1x128xf32>
    %22 = arith.subf %20, %21 : vector<1x128xf32>
    %23 = vector.broadcast %18 : vector<1x128xf32> to vector<8x128xf32>
    %24 = arith.mulf %1, %23 : vector<8x128xf32>
    %25 = vector.broadcast %22 : vector<1x128xf32> to vector<8x128xf32>
    %26 = arith.addf %24, %25 : vector<8x128xf32>
    %c0_12 = arith.constant 0 : index
    %c0_13 = arith.constant 0 : index
    %c0_14 = arith.constant 0 : index
    %27 = vector.load %arg4[%c0_12, %c0_13, %c0_14] : memref<1x128x128xf32, #tpu.memory_space<vmem>>, vector<1x128x128xf32>
    %28 = vector.shape_cast %27 : vector<1x128x128xf32> to vector<128x128xf32>
    %cst_15 = arith.constant dense<0.000000e+00> : vector<8x128xf32>
    %29 = tpu.matmul %26, %28, %cst_15 {dimension_numbers = #tpu.dot_dimension_numbers<[1], [0], [0], [1], [0, 0, 1, 1], [], []>} : vector<8x128xf32>, vector<128x128xf32>, vector<8x128xf32> -> vector<8x128xf32>
    %c0_16 = arith.constant 0 : index
    %c0_17 = arith.constant 0 : index
    %c0_18 = arith.constant 0 : index
    %30 = vector.load %arg5[%c0_16, %c0_17, %c0_18] : memref<1x1x128xf32, #tpu.memory_space<vmem>>, vector<1x1x128xf32>
    %31 = vector.shape_cast %30 : vector<1x1x128xf32> to vector<1x128xf32>
    %32 = vector.broadcast %31 : vector<1x128xf32> to vector<8x128xf32>
    %33 = arith.addf %29, %32 : vector<8x128xf32>
    %cst_19 = arith.constant 0.000000e+00 : f32
    %34 = vector.broadcast %cst_19 : f32 to vector<8x128xf32>
    %35 = arith.maximumf %33, %34 : vector<8x128xf32>
    %c0_20 = arith.constant 0 : index
    %c0_21 = arith.constant 0 : index
    %c0_22 = arith.constant 0 : index
    %36 = vector.load %arg6[%c0_20, %c0_21, %c0_22] : memref<1x128x128xf32, #tpu.memory_space<vmem>>, vector<1x128x128xf32>
    %37 = vector.shape_cast %36 : vector<1x128x128xf32> to vector<128x128xf32>
    %cst_23 = arith.constant dense<0.000000e+00> : vector<8x128xf32>
    %38 = tpu.matmul %35, %37, %cst_23 {dimension_numbers = #tpu.dot_dimension_numbers<[1], [0], [0], [1], [0, 0, 1, 1], [], []>} : vector<8x128xf32>, vector<128x128xf32>, vector<8x128xf32> -> vector<8x128xf32>
    %c0_24 = arith.constant 0 : index
    %c0_25 = arith.constant 0 : index
    %c0_26 = arith.constant 0 : index
    %39 = vector.load %arg7[%c0_24, %c0_25, %c0_26] : memref<1x1x128xf32, #tpu.memory_space<vmem>>, vector<1x1x128xf32>
    %40 = vector.shape_cast %39 : vector<1x1x128xf32> to vector<1x128xf32>
    %41 = vector.broadcast %40 : vector<1x128xf32> to vector<8x128xf32>
    %42 = arith.addf %38, %41 : vector<8x128xf32>
    %43 = arith.addf %42, %1 : vector<8x128xf32>
    %c0_27 = arith.constant 0 : index
    %c0_28 = arith.constant 0 : index
    %c0_29 = arith.constant 0 : index
    %44 = vector.load %arg8[%c0_27, %c0_28, %c0_29] : memref<1x8x128xf32, #tpu.memory_space<vmem>>, vector<1x8x128xf32>
    %45 = vector.shape_cast %44 : vector<1x8x128xf32> to vector<8x128xf32>
    %46 = vector.shape_cast %43 : vector<8x128xf32> to vector<1x8x128xf32>
    tpu.vector_store %arg8[%c0_27, %c0_28, %c0_29], %46 {strides = array<i32>} : memref<1x8x128xf32, #tpu.memory_space<vmem>>, vector<1x8x128xf32>,
    return
  }
  func.func @transform_0(%arg0: i32) -> (i32, i32, i32) {
    %c0_i32 = arith.constant 0 : i32
    %c0_i32_0 = arith.constant 0 : i32
    %c0_i32_1 = arith.constant 0 : i32
    return %arg0, %c0_i32, %c0_i32_0 : i32, i32, i32
  }
  func.func @transform_1(%arg0: i32) -> (i32, i32, i32) {
    %c0_i32 = arith.constant 0 : i32
    %c0_i32_0 = arith.constant 0 : i32
    %c0_i32_1 = arith.constant 0 : i32
    return %arg0, %c0_i32, %c0_i32_0 : i32, i32, i32
  }
  func.func @transform_2(%arg0: i32) -> (i32, i32, i32) {
    %c0_i32 = arith.constant 0 : i32
    %c0_i32_0 = arith.constant 0 : i32
    %c0_i32_1 = arith.constant 0 : i32
    return %arg0, %c0_i32, %c0_i32_0 : i32, i32, i32
  }
  func.func @transform_3(%arg0: i32) -> (i32, i32, i32) {
    %c0_i32 = arith.constant 0 : i32
    %c0_i32_0 = arith.constant 0 : i32
    %c0_i32_1 = arith.constant 0 : i32
    return %arg0, %c0_i32, %c0_i32_0 : i32, i32, i32
  }
  func.func @transform_4(%arg0: i32) -> (i32, i32, i32) {
    %c0_i32 = arith.constant 0 : i32
    %c0_i32_0 = arith.constant 0 : i32
    %c0_i32_1 = arith.constant 0 : i32
    return %arg0, %c0_i32, %c0_i32_0 : i32, i32, i32
  }
  func.func @transform_5(%arg0: i32) -> (i32, i32, i32) {
    %c0_i32 = arith.constant 0 : i32
    %c0_i32_0 = arith.constant 0 : i32
    %c0_i32_1 = arith.constant 0 : i32
    return %arg0, %c0_i32, %c0_i32_0 : i32, i32, i32
  }
  func.func @transform_6(%arg0: i32) -> (i32, i32, i32) {
    %c0_i32 = arith.constant 0 : i32
    %c0_i32_0 = arith.constant 0 : i32
    %c0_i32_1 = arith.constant 0 : i32
    return %arg0, %c0_i32, %c0_i32_0 : i32, i32, i32
  }
  func.func @transform_7(%arg0: i32) -> (i32, i32, i32) {
    %c0_i32 = arith.constant 0 : i32
    %c0_i32_0 = arith.constant 0 : i32
    %c0_i32_1 = arith.constant 0 : i32
    return %arg0, %c0_i32, %c0_i32_0 : i32, i32, i32
  }
}

</mosaic_0001>

<bundles_post_ra>
// kernel: tpu_custom_call.1
= control target key start
LH: loop header
LB: loop body
LE: loop exit
PB: predicated region body
PF: predicated region fallthrough
CT: control target
= control target key end

     0   :  { %12 = vsyncpa [#allocation3], 0  ;;  %s708_s0 = inlined_call_operand.hbm [shape: f32[1,8,128], index: 0, kind: input, shape index: {}]   ;;  %s709_s1 = inlined_call_operand.vmem [shape: f32[1,1,128], index: 1, kind: input, shape index: {}]   ;;  %s710_s2 = inlined_call_operand.vmem [shape: f32[1,1,128], index: 2, kind: input, shape index: {}]   ;;  %s711_s3 = inlined_call_operand.hbm [shape: f32[1,128,128], index: 3, kind: input, shape index: {}]   ;;  %s712_s4 = inlined_call_operand.vmem [shape: f32[1,1,128], index: 4, kind: input, shape index: {}]   ;;  %s713_s5 = inlined_call_operand.hbm [shape: f32[1,128,128], index: 5, kind: input, shape index: {}]   ;;  %s714_s6 = inlined_call_operand.vmem [shape: f32[1,1,128], index: 6, kind: input, shape index: {}]   ;;  %s715_s7 = inlined_call_operand.hbm [shape: f32[1,8,128], index: 7, kind: output, shape index: {}]  }
   0x1   :  { %13 = vsyncpa [#allocation6], 0 }
   0x2   :  { %14 = vsyncpa [#allocation4], 0  ;;  %s569_s24 = smov [#allocation5]   ;;  %s475_s28 = scalar_lea.hbm %s711_s3, 2048 }
   0x3   :  { %s34_s25 = sshll.u32 %s569_s24, 4  ;;  %p476_p0 = scmp.ne.s32.totalorder %s711_s3, %s475_s28  ;;  %s35_s25 = int_to_ptr.vmem [resolvable:$true] %s34_s25 }
   0x4   :  { %p479_p1 = scmp.lt.u32.totalorder %s475_s28, %s711_s3 }
   0x6   :  { %p481_p2 = pnand %p479_p1, %p476_p0 }
   0x8   :  { %484 = shalt.err (!%p481_p2)
}
   0x9   :  { %s485_s10 = scalar_lea.vmem %s35_s25, 2048  ;;  %p490_p4 = scmp.lt.s32.totalorder %s35_s25, %s35_s25 }
   0xa   :  { %p486_p3 = scmp.ne.s32.totalorder %s35_s25, %s485_s10  ;;  %p491_p5 = scmp.lt.s32.totalorder %s485_s10, %s485_s10 }
   0xc   :  { %p492_p6 = por %p491_p5, %p490_p4 }
   0xe   :  { %p493_p7 = pnand %p492_p6, %p486_p3 }
  0x10   :  { %496 = shalt.err (!%p493_p7)
}
  0x11   :  { %s570_s11 = smov 128   ;;  %s571_s12 = smov 8  }
  0x12   :  { %40 = dma.hbm_to_vmem [thread:$0]  %s711_s3, 2048, %s35_s25, [#allocation6], %s570_s11, %s570_s11, %s571_s12  }
  0x13   :  { %s572_s15 = smov [#allocation2]   ;;  %s573_s17 = smov [#allocation7]  }
  0x14   :  { %s21_s16 = sshll.u32 %s572_s15, 4  ;;  %s48_s18 = sshll.u32 %s573_s17, 4  ;;  %s22_s16 = int_to_ptr.vmem [resolvable:$true] %s21_s16  ;;  %s49_s18 = int_to_ptr.vmem [resolvable:$true] %s48_s18 }
  0x15   :  { %s497_s21 = scalar_lea.hbm %s708_s0, 128 }
  0x16   :  { %p498_p8 = scmp.ne.s32.totalorder %s708_s0, %s497_s21  ;;  %p501_p9 = scmp.lt.u32.totalorder %s497_s21, %s708_s0 }
  0x18   :  { %p503_p10 = pnand %p501_p9, %p498_p8 }
  0x1a   :  { %506 = shalt.err (!%p503_p10)
}
  0x1b   :  { %s507_s3 = scalar_lea.vmem %s22_s16, 128  ;;  %p512_p12 = scmp.lt.s32.totalorder %s22_s16, %s22_s16 }
  0x1c   :  { %p508_p11 = scmp.ne.s32.totalorder %s22_s16, %s507_s3  ;;  %p513_p13 = scmp.lt.s32.totalorder %s507_s3, %s507_s3 }
  0x1e   :  { %p514_p0 = por %p513_p13, %p512_p12 }
  0x20   :  { %p515_p1 = pnand %p514_p0, %p508_p11 }
  0x22   :  { %518 = shalt.err (!%p515_p1)
}
  0x23   :  { %24 = dma.hbm_to_vmem [thread:$0]  %s708_s0, 128, %s22_s16, [#allocation3]  }
  0x24   :  { %s519_s30 = scalar_lea.hbm %s713_s5, 2048 }
  0x25   :  { %p520_p2 = scmp.ne.s32.totalorder %s713_s5, %s519_s30  ;;  %p523_p3 = scmp.lt.u32.totalorder %s519_s30, %s713_s5 }
  0x27   :  { %p525_p4 = pnand %p523_p3, %p520_p2 }
  0x29   :  { %528 = shalt.err (!%p525_p4)
}
  0x2a   :  { %s529_s14 = scalar_lea.vmem %s49_s18, 2048  ;;  %p534_p6 = scmp.lt.s32.totalorder %s49_s18, %s49_s18 }
  0x2b   :  { %p530_p5 = scmp.ne.s32.totalorder %s49_s18, %s529_s14  ;;  %p535_p7 = scmp.lt.s32.totalorder %s529_s14, %s529_s14 }
  0x2d   :  { %p536_p8 = por %p535_p7, %p534_p6 }
  0x2f   :  { %p537_p9 = pnand %p536_p8, %p530_p5 }
  0x31   :  { %540 = shalt.err (!%p537_p9)
}
  0x32   :  { %54 = dma.hbm_to_vmem [thread:$0]  %s713_s5, 2048, %s49_s18, [#allocation6], %s570_s11, %s570_s11, %s571_s12  }
  0x33   :  { %563 = dma.done.wait [#allocation3], 128  }
  0x34   :  { %564 = vsyncadd [#allocation3], 4294967168 }
  0x35   :  { %565 = dma.done.wait [#allocation6], 4096  }
  0x36   :  { %566 = vsyncadd [#allocation6], 4294963200  ;;  %v574_v0 = vmov 0.0|0.0   ;;  %vm575_vm0 = vmmov 0   ;;  %v576_v1 = vmov 0.0   ;;  %v105_v2 = vld [vmem:[#allocation5] sm:$0xff] }
  0x37   :  { %416 = vmatprep.subr.bf16.mxu0 %v574_v0  ;;  %378 = vmatprep.mubr.msk.f32.mxu0 %vm575_vm0, %v576_v1  ;;  %v106_v3 = vld [vmem:[#allocation5 + $0x8] sm:$0xff]  ;;  %v107_v4 = vld [vmem:[#allocation5 + $0x10] sm:$0xff]  ;;  %v108_v6 = vld [vmem:[#allocation5 + $0x18] sm:$0xff]  ;;  %s577_s19 = smov [#allocation8]  }
  0x38   :  { %440 = vmatprep.subr.bf16.mxu1 %v574_v0  ;;  %413 = vmatprep.mubr.msk.f32.mxu1 %vm575_vm0, %v576_v1  ;;  %v417_v5 = vpack.c.bf16 %v106_v3, %v105_v2  ;;  %v420_v7 = vpack.c.bf16 %v108_v6, %v107_v4  ;;  %v109_v8 = vld [vmem:[#allocation5 + $0x20] sm:$0xff]  ;;  %v110_v9 = vld [vmem:[#allocation5 + $0x28] sm:$0xff]  ;;  %v663_v10 = vld [vmem:[#allocation2] sm:$0xff]  ;;  %v92_v2 = vlaneseq  ;;  %s300_s20 = sshll.u32 %s577_s19, 4  ;;  %s301_s20 = int_to_ptr.vmem [resolvable:$true] %s300_s20 }
  0x39   :  { %v67_v11 = vrot.slane %v663_v10, 4  ;;  %v73_v12 = vmul.f32 %v663_v10, %v663_v10  ;;  %v199_v13 = vld [vmem:[#allocation7] sm:$0xff]  ;;  %v200_v14 = vld [vmem:[#allocation7 + $0x8] sm:$0xff]  ;;  %v423_v15 = vpack.c.bf16 %v110_v9, %v109_v8  ;;  %v201_v17 = vld [vmem:[#allocation7 + $0x10] sm:$0xff]  ;;  %s541_s21 = scalar_lea.vmem %s301_s20, 128  ;;  %p546_p11 = scmp.lt.s32.totalorder %s301_s20, %s301_s20 }
  0x3a   :  { %418 = vmatpush3.bf16.msra.mxu0 %v417_v5  ;;  %v441_v16 = vpack.c.bf16 %v200_v14, %v199_v13  ;;  %v202_v18 = vld [vmem:[#allocation7 + $0x18] sm:$0xff]  ;;  %v111_v19 = vld [vmem:[#allocation5 + $0x30] sm:$0xff]  ;;  %v203_v26 = vld [vmem:[#allocation7 + $0x20] sm:$0xff]  ;;  %v93_v4 = vshrl.u32 %v92_v2, 7  ;;  %p542_p10 = scmp.ne.s32.totalorder %s301_s20, %s541_s21  ;;  %p547_p12 = scmp.lt.s32.totalorder %s541_s21, %s541_s21 }
  0x3b   :  { %419 = vmatprep.subr.bf16.mxu0 %v574_v0  ;;  %v112_v20 = vld [vmem:[#allocation5 + $0x38] sm:$0xff]  ;;  %v68_v21 = vadd.f32 %v67_v11, %v663_v10  ;;  %v74_v22 = vrot.slane %v73_v12, 4  ;;  %v444_v23 = vpack.c.bf16 %v202_v18, %v201_v17  ;;  %v204_v27 = vld [vmem:[#allocation7 + $0x28] sm:$0xff]  ;;  %v113_v29 = vld [vmem:[#allocation5 + $0x40] sm:$0xff] }
  0x3c   :  { %442 = vmatpush3.bf16.msra.mxu1 %v441_v16  ;;  %v426_v28 = vpack.c.bf16 %v112_v20, %v111_v19  ;;  %v114_v30 = vld [vmem:[#allocation5 + $0x48] sm:$0xff]  ;;  %v447_v33 = vpack.c.bf16 %v204_v27, %v203_v26  ;;  %v205_v36 = vld [vmem:[#allocation7 + $0x30] sm:$0xff]  ;;  %v206_v37 = vld [vmem:[#allocation7 + $0x38] sm:$0xff]  ;;  %v94_v6 = vsub.s32 0, %v93_v4  ;;  %p548_p13 = por %p547_p12, %p546_p11 }
  0x3d   :  { %v69_v24 = vrot.slane %v68_v21, 2  ;;  %v75_v25 = vadd.f32 %v74_v22, %v73_v12  ;;  %443 = vmatprep.subr.bf16.mxu1 %v574_v0  ;;  %v429_v38 = vpack.c.bf16 %v114_v30, %v113_v29  ;;  %v115_v39 = vld [vmem:[#allocation5 + $0x50] sm:$0xff]  ;;  %v116_v40 = vld [vmem:[#allocation5 + $0x58] sm:$0xff]  ;;  %v450_v43 = vpack.c.bf16 %v206_v37, %v205_v36  ;;  %v207_v46 = vld [vmem:[#allocation7 + $0x40] sm:$0xff] }
  0x3e   :  { %421 = vmatpush3.bf16.msra.mxu0 %v420_v7  ;;  %v208_v47 = vld [vmem:[#allocation7 + $0x48] sm:$0xff]  ;;  %v432_v48 = vpack.c.bf16 %v116_v40, %v115_v39  ;;  %v117_v49 = vld [vmem:[#allocation5 + $0x60] sm:$0xff]  ;;  %v209_v55 = vld [vmem:[#allocation7 + $0x50] sm:$0xff]  ;;  %p549_p0 = pnand %p548_p13, %p542_p10 }
  0x3f   :  { %422 = vmatprep.subr.bf16.mxu0 %v574_v0  ;;  %v70_v31 = vadd.f32 %v69_v24, %v68_v21  ;;  %v76_v32 = vrot.slane %v75_v25, 2  ;;  %v118_v50 = vld [vmem:[#allocation5 + $0x68] sm:$0xff]  ;;  %v453_v53 = vpack.c.bf16 %v208_v47, %v207_v46  ;;  %v210_v56 = vld [vmem:[#allocation7 + $0x58] sm:$0xff]  ;;  %v119_v58 = vld [vmem:[#allocation5 + $0x70] sm:$0xff] }
  0x40   :  { %445 = vmatpush3.bf16.msra.mxu1 %v444_v23  ;;  %v435_v57 = vpack.c.bf16 %v118_v50, %v117_v49  ;;  %v120_v59 = vld [vmem:[#allocation5 + $0x78] sm:$0xff]  ;;  %v456_v61 = vpack.c.bf16 %v210_v56, %v209_v55  ;;  %v211_v62 = vld [vmem:[#allocation7 + $0x60] sm:$0xff]  ;;  %v212_v63 = vld [vmem:[#allocation7 + $0x68] sm:$0xff] }
  0x41   :  { %v71_v34 = vrot.slane %v70_v31, 1  ;;  %v77_v35 = vadd.f32 %v76_v32, %v75_v25  ;;  %446 = vmatprep.subr.bf16.mxu1 %v574_v0  ;;  %v438_v1 = vpack.c.bf16 %v120_v59, %v119_v58  ;;  %v459_v3 = vpack.c.bf16 %v212_v63, %v211_v62  ;;  %v84_v5 = vld [vmem:[%s709_s1] sm:$0x1]  ;;  %v213_v17 = vld [vmem:[#allocation7 + $0x70] sm:$0xff] }
  0x42   :  { %424 = vmatpush3.bf16.msra.mxu0 %v423_v15  ;;  %v88_v9 = vld [vmem:[%s710_s2] sm:$0x1] }
  0x43   :  { %425 = vmatprep.subr.bf16.mxu0 %v574_v0  ;;  %v72_v41 = vadd.f32 %v71_v34, %v70_v31  ;;  %v78_v42 = vrot.slane %v77_v35, 1  ;;  %v214_v18 = vld [vmem:[#allocation7 + $0x78] sm:$0xff] }
  0x44   :  { %448 = vmatpush3.bf16.msra.mxu1 %v447_v33  ;;  %v462_v19 = vpack.c.bf16 %v214_v18, %v213_v17  ;;  %v311_v24 = vld [vmem:[%s714_s6] ss:$0 sm:$0xff] }
  0x45   :  { %v79_v44 = vadd.f32 %v78_v42, %v77_v35  ;;  %v80_v45 = vmul.f32 0.125, %v72_v41  ;;  %449 = vmatprep.subr.bf16.mxu1 %v574_v0 }
  0x46   :  { %427 = vmatpush3.bf16.msra.mxu0 %v426_v28 }
  0x47   :  { %428 = vmatprep.subr.bf16.mxu0 %v574_v0  ;;  %v81_v51 = vmul.f32 0.125, %v79_v44  ;;  %v82_v52 = vmul.f32 %v80_v45, %v80_v45 }
  0x48   :  { %451 = vmatpush3.bf16.msra.mxu1 %v450_v43 }
  0x49   :  { %v83_v54 = vsub.f32 %v81_v51, %v82_v52  ;;  %452 = vmatprep.subr.bf16.mxu1 %v574_v0 }
  0x4a   :  { %430 = vmatpush3.bf16.msra.mxu0 %v429_v38 }
  0x4b   :  { %431 = vmatprep.subr.bf16.mxu0 %v574_v0  ;;  %v85_v60 = vadd.f32 1e-05, %v83_v54 }
  0x4c   :  { %454 = vmatpush3.bf16.msra.mxu1 %v453_v53 }
  0x4d   :  { %473 = vrsqrt.f32 %v85_v60  ;;  %455 = vmatprep.subr.bf16.mxu1 %v574_v0 }
  0x4e   :  { %433 = vmatpush3.bf16.msra.mxu0 %v432_v48 }
  0x4f   :  { %434 = vmatprep.subr.bf16.mxu0 %v574_v0 }
  0x50   :  { %457 = vmatpush3.bf16.msra.mxu1 %v456_v61 }
  0x51   :  { %458 = vmatprep.subr.bf16.mxu1 %v574_v0 }
  0x52   :  { %436 = vmatpush3.bf16.msra.mxu0 %v435_v57 }
  0x53   :  { %437 = vmatprep.subr.bf16.mxu0 %v574_v0 }
  0x54   :  { %460 = vmatpush3.bf16.msra.mxu1 %v459_v3 }
  0x55   :  { %461 = vmatprep.subr.bf16.mxu1 %v574_v0  ;;  %v310_v0 = vld [vmem:[%s712_s4] ss:$0 sm:$0xff] }
  0x56   :  { %439 = vmatpush3.bf16.msra.mxu0 %v438_v1 }
  0x57   :  { %v474_v7 = vpop.eup %473 }
  0x58   :  { %v87_v8 = vmul.f32 %v474_v7, %v84_v5  ;;  %463 = vmatpush3.bf16.msra.mxu1 %v462_v19 }
  0x5a   :  { %v89_v11 = vmul.f32 %v87_v8, %v80_v45  ;;  %v95_v12 = vrot.slane %v87_v8, %v94_v6 }
  0x5c   :  { %v90_v13 = vsub.f32 %v88_v9, %v89_v11  ;;  %v97_v14 = vmul.f32 %v95_v12, %v663_v10 }
  0x5e   :  { %v102_v15 = vrot.slane %v90_v13, %v94_v6 }
  0x60   :  { %v104_v16 = vadd.f32 %v102_v15, %v97_v14 }
  0x62   :  { %379 = vmatmul.mubr.f32.vlgmr.msra.gmra.mrb[0].mxu0 %v104_v16 }
 0x135   :  { %v194_v20 = vpop.f32.mrb[0].mxu0 }
 0x136   :  { %v195_v21 = vadd.f32 %v310_v0, %v194_v20  ;;  %v380_v22 = vpop.f32.mrb[1].mxu0 }
 0x138   :  { %v198_v23 = vmax.f32 %v195_v21, 0.0 }
 0x13a   :  { %414 = vmatmul.mubr.f32.vlgmr.msra.gmra.mrb[0].mxu1 %v198_v23 }
 0x20d   :  { %v288_v25 = vpop.f32.mrb[0].mxu1 }
 0x20e   :  { %v289_v26 = vadd.f32 %v311_v24, %v288_v25  ;;  %v415_v27 = vpop.f32.mrb[1].mxu1 }
 0x210   :  { %v292_v28 = vadd.f32 %v289_v26, %v663_v10 }
 0x212   :  { %293 = vst [vmem:[#allocation8] sm:$0xff] %v292_v28 }
 0x213   :  { %552 = shalt.err (!%p549_p0)
}
 0x214   :  { %s553_s6 = scalar_lea.hbm %s715_s7, 128 }
 0x215   :  { %p554_p1 = scmp.ne.s32.totalorder %s715_s7, %s553_s6  ;;  %p557_p2 = scmp.lt.u32.totalorder %s553_s6, %s715_s7 }
 0x217   :  { %p559_p3 = pnand %p557_p2, %p554_p1 }
 0x219   :  { %562 = shalt.err (!%p559_p3)
}
 0x21a   :  { %303 = dma.vmem_to_hbm [thread:$0]  %s301_s20, 128, %s715_s7, [#allocation4]  }
 0x21b   :  { %567 = dma.done.wait [#allocation4], 128  }
 0x21c   :  { %568 = vsyncadd [#allocation4], 4294967168 }
 0x21d   :  { %307 = vsyncpa [#allocation3], 1 }
 0x21e   :  { %308 = vsyncpa [#allocation6], 1 }
 0x21f   :  { %309 = vsyncpa [#allocation4], 1 }

</bundles_post_ra>
